<compile_context>
chip_gen: v7x
topology: tpu7x:2x2x1
jax: 0.10.0
libtpu: 0.0.40
codegen_flags: <defaults>
</compile_context>

<pallas_src>
import numpy as np
import jax
import jax.numpy as jnp
from jax.experimental import pallas as pl
from jax.experimental.pallas import tpu as pltpu


# ----------------------------------------------------------------------------- helpers

def _gaussian_taps(scale):
    """1-D Gaussian taps exactly as torch AntiAliasInterpolation2d builds them (scale < 1)."""
    sigma = (1.0 / scale - 1.0) / 2.0
    ksize = 2 * int(round(sigma * 4)) + 1          # Python round, as in the torch module
    t = np.arange(ksize, dtype=np.float64)
    mean = (ksize - 1) / 2.0
    g = np.exp(-((t - mean) ** 2) / (2.0 * sigma ** 2))
    g = g / g.sum()                                # product of normalized 1-D == normalized 2-D
    return g, ksize


def _downsample_matrix(size, scale):
    """(Ho, size) matrix folding zero-pad + 1-D Gaussian blur + ::int(1/scale) decimation."""
    g, ksize = _gaussian_taps(scale)
    ka = ksize // 2                                # ksize is odd -> pad is (ka, ka)
    inv = int(1.0 / scale)                         # same truncation as the torch module
    out_rows = range(0, size, inv)                 # conv output length == size (pad folds exactly)
    m = np.zeros((len(out_rows), size), dtype=np.float64)
    for oi, o in enumerate(out_rows):
        for p in range(ksize):
            h = o + p - ka
            if 0 <= h < size:
                m[oi, h] += g[p]                   # taps landing in the zero-pad are dropped
    return m.astype(np.float32)


def _round_up(x, m):
    return -(-x // m) * m


def _vmem_capacity_bytes():
    """Generation-aware VMEM capacity; conservative (v7x-sized) fallback."""
    try:
        cap = int(getattr(pltpu.get_tpu_info(), "vmem_capacity_bytes", 0))
        if cap > 0:
            return cap
    except Exception:
        pass
    return 64 * 2 ** 20


def _pick_plane_block(num_planes, footprint, budget, min_grid=4):
    """Largest plane block fitting `budget`, capped so the grid has >= min_grid steps.

    Prefers a divisor of num_planes (no padding) when one of comparable size exists."""
    max_block = max(1, -(-num_planes // min(min_grid, num_planes)))
    best = 1
    for d in range(1, max_block + 1):
        if footprint(d) <= budget:
            best = d
    for d in range(best, 0, -1):                   # divisor at least half as big -> no padding
        if num_planes % d == 0 and 2 * d > best:
            return d
    return best


# ----------------------------------------------------------------------------- kernel

def _build_kernel(plane_block, num_scales, seg_off, seg_pad, out_hw):
    def kernel(*refs):
        x_ref = refs[0]                            # (plane_block, H, W)   input dtype
        r_ref = refs[1]                            # (sum_hop, H)          input dtype, VMEM-resident
        ct_refs = refs[2:2 + num_scales]           # (W, Wo_s)             input dtype, VMEM-resident
        out_refs = refs[2 + num_scales:]           # (plane_block, Ho_s, Wo_s)

        r_all = r_ref[...]
        # Row (height) blur + decimation for ALL scales at once: one native-dtype MXU
        # matmul per plane with full lane width N = W, f32 accumulation.
        rowed = [jnp.dot(r_all, x_ref[c], preferred_element_type=jnp.float32)
                 for c in range(plane_block)]      # each (sum_hop, W), f32

        for s in range(num_scales):
            off, hop = seg_off[s], seg_pad[s]
            ho, wo = out_hw[s]
            ct = ct_refs[s][...]                   # (W, Wo_s)
            # Stack this scale's (8-aligned) row segment across all planes in the block
            # -> ONE column matmul with M = plane_block*hop (RHS weights pushed once).
            stacked = jnp.concatenate([rc[off:off + hop, :] for rc in rowed], axis=0)
            colled = jnp.dot(stacked.astype(ct.dtype), ct,
                             preferred_element_type=jnp.float32)      # (P*hop, Wo_s)
            colled = colled.reshape(plane_block, hop, wo)
            out_refs[s][...] = colled[:, :ho, :].astype(out_refs[s].dtype)
    return kernel


# ----------------------------------------------------------------------------- module

class ImagePyramide:
    """JAX/Pallas port of the PyTorch ImagePyramide (anti-aliased downsample per scale)."""

    def __init__(self, scales, num_channels):
        self.scales = list(scales)
        self.num_channels = num_channels           # kept for parity with the torch module

    def __call__(self, x):
        n, c, h, w = x.shape
        num_planes = n * c
        dtype = x.dtype
        itemsize = np.dtype(dtype).itemsize

        # Mirror torch's ModuleDict keyed by str(scale) (duplicates collapse).
        keyed = {}
        for s in self.scales:
            keyed.setdefault(str(s), float(s))

        out_dict = {}
        work = []
        for k, s in keyed.items():
            if s == 1.0:
                out_dict['prediction_' + k] = x    # identity scale: passthrough
            else:
                if not (0.0 < s < 1.0):
                    raise ValueError(f"ImagePyramide: scale {s} must be 1.0 or in (0, 1).")
                work.append((k, s))
        if not work:
            return out_dict

        # ---- fold blur + decimation into matrices; stack R segments (8-row aligned) ----
        r_segs, ct_mats, out_hw, seg_off, seg_pad = [], [], [], [], []
        off = 0
        for _, s in work:
            rm = _downsample_matrix(h, s)          # (Ho, H)
            cm = _downsample_matrix(w, s)          # (Wo, W)
            ho, wo = rm.shape[0], cm.shape[0]
            hop = _round_up(ho, 8)                 # sublane-aligned segment
            rm_pad = np.zeros((hop, h), np.float32)
            rm_pad[:ho] = rm
            r_segs.append(rm_pad)
            ct_mats.append(jnp.asarray(cm.T, dtype=dtype))          # (W, Wo)
            out_hw.append((ho, wo))
            seg_off.append(off)
            seg_pad.append(hop)
            off += hop
        sum_hop = off
        r_all = jnp.asarray(np.concatenate(r_segs, axis=0), dtype=dtype)   # (sum_hop, H)

        # ---- VMEM-budgeted plane block (IO blocks + resident matrices + f32 live values) ----
        out_elems = sum(ho * wo for ho, wo in out_hw)
        hop_max = max(seg_pad)
        wo_max = max(wo for _, wo in out_hw)
        resident = 2 * (sum_hop * h + w * sum(wo for _, wo in out_hw)) * itemsize

        def footprint(p):
            io = 2 * p * h * w * itemsize + 2 * p * out_elems * itemsize   # double-buffered IO
            live = (p * sum_hop * w + p * hop_max * w + p * hop_max * wo_max) * 4  # f32 temps
            return io + live + resident

        cap = _vmem_capacity_bytes()
        budget = cap // 5                                  # ~25 MiB on 128 MiB parts, ~13 MiB on v7x
        vmem_limit = min(cap * 3 // 4, 96 * 2 ** 20)

        plane_block = _pick_plane_block(num_planes, footprint, budget)
        padded_planes = _round_up(num_planes, plane_block)
        grid = (padded_planes // plane_block,)

        x3 = x.reshape(num_planes, h, w)                   # free reshape (contiguous NCHW)
        if padded_planes != num_planes:
            x3 = jnp.pad(x3, ((0, padded_planes - num_planes), (0, 0), (0, 0)))

        in_specs = [pl.BlockSpec((plane_block, h, w), lambda i: (i, 0, 0)),
                    pl.BlockSpec((sum_hop, h), lambda i: (0, 0))]
        in_specs += [pl.BlockSpec((w, wo), lambda i: (0, 0)) for _, wo in out_hw]
        out_specs = tuple(pl.BlockSpec((plane_block, ho, wo), lambda i: (i, 0, 0))
                          for ho, wo in out_hw)
        out_shapes = tuple(jax.ShapeDtypeStruct((padded_planes, ho, wo), dtype)
                           for ho, wo in out_hw)

        call = pl.pallas_call(
            _build_kernel(plane_block, len(work), tuple(seg_off), tuple(seg_pad),
                          tuple(out_hw)),
            out_shape=out_shapes,
            grid=grid,
            in_specs=tuple(in_specs),
            out_specs=out_specs,
            compiler_params=pltpu.CompilerParams(
                dimension_semantics=("parallel",),
                vmem_limit_bytes=int(vmem_limit),
            ),
        )

        results = call(x3, r_all, *ct_mats)
        if not isinstance(results, (tuple, list)):
            results = (results,)
        for (k, _), res, (ho, wo) in zip(work, results, out_hw):
            out_dict['prediction_' + k] = res[:num_planes].reshape(n, c, ho, wo)
        return out_dict


# ----------------------------------------------------------------------------- reference

def _reference_scale(x, scale):
    """Pure-XLA reference: zero-pad + depthwise 2-D Gaussian conv + ::inv decimation
    (mirrors torch AntiAliasInterpolation2d.forward)."""
    if float(scale) == 1.0:
        return x
    n, c, h, w = x.shape
    g, ksize = _gaussian_taps(scale)
    ka = ksize // 2
    inv = int(1.0 / scale)
    k2 = np.outer(g, g)
    k2 = k2 / k2.sum()
    weight = jnp.asarray(np.broadcast_to(k2[None, None], (c, 1, ksize, ksize)),
                         dtype=x.dtype)
    xp = jnp.pad(x, ((0, 0), (0, 0), (ka, ka), (ka, ka)))
    out = jax.lax.conv_general_dilated(
        xp, weight, window_strides=(1, 1), padding="VALID",
        dimension_numbers=("NCHW", "OIHW", "NCHW"),
        feature_group_count=c,
        precision=jax.lax.Precision.HIGHEST)
    return out[:, :, ::inv, ::inv]


# ----------------------------------------------------------------------------- demo

if __name__ == "__main__":
    key = jax.random.PRNGKey(0)
    N, C, H, W = 2, 4, 16, 16
    x = jax.random.normal(key, (N, C, H, W), dtype=jnp.float32)

    scales = (1.0, 0.5, 0.25)
    pyramid = ImagePyramide(scales, num_channels=C)

    out = pyramid(x)
    out = {k: jax.block_until_ready(v) for k, v in out.items()}

    for s in scales:
        got = np.asarray(out[f"prediction_{s}"])
        ref = np.asarray(_reference_scale(x, s))
        np.testing.assert_allclose(got, ref, rtol=5e-4, atol=5e-4)

    print("KERNEL_OK")
</pallas_src>

<mosaic_0001>
module attributes {stable_mosaic.version = 11 : i64} {
  func.func @kernel(%arg0: i32, %arg1: memref<2x16x16xf32, #tpu.memory_space<vmem>>, %arg2: memref<16x16xf32, #tpu.memory_space<vmem>>, %arg3: memref<16x8xf32, #tpu.memory_space<vmem>>, %arg4: memref<16x4xf32, #tpu.memory_space<vmem>>, %arg5: memref<2x8x8xf32, #tpu.memory_space<vmem>>, %arg6: memref<2x4x4xf32, #tpu.memory_space<vmem>>) attributes {dimension_semantics = [#tpu.dimension_semantics<parallel>], iteration_bounds = array<i64: 4>, scalar_prefetch = 0 : i64, scratch_operands = 0 : i64, tpu.core_type = #tpu.core_type<tc>, window_params = [{transform_indices = @transform_0, window_bounds = array<i64: 2, 16, 16>}, {pipeline_mode = #tpu.pipeline_mode<synchronous>, transform_indices = @transform_1, window_bounds = array<i64: 16, 16>}, {pipeline_mode = #tpu.pipeline_mode<synchronous>, transform_indices = @transform_2, window_bounds = array<i64: 16, 8>}, {pipeline_mode = #tpu.pipeline_mode<synchronous>, transform_indices = @transform_3, window_bounds = array<i64: 16, 4>}, {transform_indices = @transform_4, window_bounds = array<i64: 2, 8, 8>}, {transform_indices = @transform_5, window_bounds = array<i64: 2, 4, 4>}]} {
    %c0 = arith.constant 0 : index
    %c0_0 = arith.constant 0 : index
    %0 = vector.load %arg2[%c0, %c0_0] : memref<16x16xf32, #tpu.memory_space<vmem>>, vector<16x16xf32>
    %c0_1 = arith.constant 0 : index
    %c0_2 = arith.constant 0 : index
    %c0_3 = arith.constant 0 : index
    %1 = vector.load %arg1[%c0_1, %c0_2, %c0_3] : memref<2x16x16xf32, #tpu.memory_space<vmem>>, vector<1x16x16xf32>
    %2 = vector.shape_cast %1 : vector<1x16x16xf32> to vector<16x16xf32>
    %cst = arith.constant dense<0.000000e+00> : vector<16x16xf32>
    %3 = tpu.matmul %0, %2, %cst {dimension_numbers = #tpu.dot_dimension_numbers<[1], [0], [0], [1], [0, 0, 1, 1], [], []>} : vector<16x16xf32>, vector<16x16xf32>, vector<16x16xf32> -> vector<16x16xf32>
    %c1 = arith.constant 1 : index
    %c0_4 = arith.constant 0 : index
    %c0_5 = arith.constant 0 : index
    %4 = vector.load %arg1[%c1, %c0_4, %c0_5] : memref<2x16x16xf32, #tpu.memory_space<vmem>>, vector<1x16x16xf32>
    %5 = vector.shape_cast %4 : vector<1x16x16xf32> to vector<16x16xf32>
    %cst_6 = arith.constant dense<0.000000e+00> : vector<16x16xf32>
    %6 = tpu.matmul %0, %5, %cst_6 {dimension_numbers = #tpu.dot_dimension_numbers<[1], [0], [0], [1], [0, 0, 1, 1], [], []>} : vector<16x16xf32>, vector<16x16xf32>, vector<16x16xf32> -> vector<16x16xf32>
    %c0_7 = arith.constant 0 : index
    %c0_8 = arith.constant 0 : index
    %7 = vector.load %arg3[%c0_7, %c0_8] : memref<16x8xf32, #tpu.memory_space<vmem>>, vector<16x8xf32>
    %8 = vector.extract_strided_slice %3 {offsets = [0, 0], sizes = [8, 16], strides = [1, 1]} : vector<16x16xf32> to vector<8x16xf32>
    %9 = vector.extract_strided_slice %6 {offsets = [0, 0], sizes = [8, 16], strides = [1, 1]} : vector<16x16xf32> to vector<8x16xf32>
    %10 = tpu.concatenate %8, %9 in 0 : vector<8x16xf32>, vector<8x16xf32> -> vector<16x16xf32>
    %cst_9 = arith.constant dense<0.000000e+00> : vector<16x8xf32>
    %11 = tpu.matmul %10, %7, %cst_9 {dimension_numbers = #tpu.dot_dimension_numbers<[1], [0], [0], [1], [0, 0, 1, 1], [], []>} : vector<16x16xf32>, vector<16x8xf32>, vector<16x8xf32> -> vector<16x8xf32>
    %12 = vector.shape_cast %11 : vector<16x8xf32> to vector<2x8x8xf32>
    %c0_10 = arith.constant 0 : index
    %c0_11 = arith.constant 0 : index
    %c0_12 = arith.constant 0 : index
    %13 = vector.load %arg5[%c0_10, %c0_11, %c0_12] : memref<2x8x8xf32, #tpu.memory_space<vmem>>, vector<2x8x8xf32>
    tpu.vector_store %arg5[%c0_10, %c0_11, %c0_12], %12 {strides = array<i32>} : memref<2x8x8xf32, #tpu.memory_space<vmem>>, vector<2x8x8xf32>,
    %c0_13 = arith.constant 0 : index
    %c0_14 = arith.constant 0 : index
    %14 = vector.load %arg4[%c0_13, %c0_14] : memref<16x4xf32, #tpu.memory_space<vmem>>, vector<16x4xf32>
    %15 = vector.extract_strided_slice %3 {offsets = [8, 0], sizes = [8, 16], strides = [1, 1]} : vector<16x16xf32> to vector<8x16xf32>
    %16 = vector.extract_strided_slice %6 {offsets = [8, 0], sizes = [8, 16], strides = [1, 1]} : vector<16x16xf32> to vector<8x16xf32>
    %17 = tpu.concatenate %15, %16 in 0 : vector<8x16xf32>, vector<8x16xf32> -> vector<16x16xf32>
    %cst_15 = arith.constant dense<0.000000e+00> : vector<16x4xf32>
    %18 = tpu.matmul %17, %14, %cst_15 {dimension_numbers = #tpu.dot_dimension_numbers<[1], [0], [0], [1], [0, 0, 1, 1], [], []>} : vector<16x16xf32>, vector<16x4xf32>, vector<16x4xf32> -> vector<16x4xf32>
    %19 = vector.shape_cast %18 : vector<16x4xf32> to vector<2x8x4xf32>
    %20 = vector.extract_strided_slice %19 {offsets = [0, 0, 0], sizes = [2, 4, 4], strides = [1, 1, 1]} : vector<2x8x4xf32> to vector<2x4x4xf32>
    %c0_16 = arith.constant 0 : index
    %c0_17 = arith.constant 0 : index
    %c0_18 = arith.constant 0 : index
    %21 = vector.load %arg6[%c0_16, %c0_17, %c0_18] : memref<2x4x4xf32, #tpu.memory_space<vmem>>, vector<2x4x4xf32>
    tpu.vector_store %arg6[%c0_16, %c0_17, %c0_18], %20 {strides = array<i32>} : memref<2x4x4xf32, #tpu.memory_space<vmem>>, vector<2x4x4xf32>,
    return
  }
  func.func @transform_0(%arg0: i32) -> (i32, i32, i32) {
    %c0_i32 = arith.constant 0 : i32
    %c0_i32_0 = arith.constant 0 : i32
    %c0_i32_1 = arith.constant 0 : i32
    return %arg0, %c0_i32, %c0_i32_0 : i32, i32, i32
  }
  func.func @transform_1(%arg0: i32) -> (i32, i32) {
    %c0_i32 = arith.constant 0 : i32
    %c0_i32_0 = arith.constant 0 : i32
    %c0_i32_1 = arith.constant 0 : i32
    return %c0_i32, %c0_i32_0 : i32, i32
  }
  func.func @transform_2(%arg0: i32) -> (i32, i32) {
    %c0_i32 = arith.constant 0 : i32
    %c0_i32_0 = arith.constant 0 : i32
    %c0_i32_1 = arith.constant 0 : i32
    return %c0_i32, %c0_i32_0 : i32, i32
  }
  func.func @transform_3(%arg0: i32) -> (i32, i32) {
    %c0_i32 = arith.constant 0 : i32
    %c0_i32_0 = arith.constant 0 : i32
    %c0_i32_1 = arith.constant 0 : i32
    return %c0_i32, %c0_i32_0 : i32, i32
  }
  func.func @transform_4(%arg0: i32) -> (i32, i32, i32) {
    %c0_i32 = arith.constant 0 : i32
    %c0_i32_0 = arith.constant 0 : i32
    %c0_i32_1 = arith.constant 0 : i32
    return %arg0, %c0_i32, %c0_i32_0 : i32, i32, i32
  }
  func.func @transform_5(%arg0: i32) -> (i32, i32, i32) {
    %c0_i32 = arith.constant 0 : i32
    %c0_i32_0 = arith.constant 0 : i32
    %c0_i32_1 = arith.constant 0 : i32
    return %arg0, %c0_i32, %c0_i32_0 : i32, i32, i32
  }
}

</mosaic_0001>

<bundles_post_ra>
// kernel: tpu_custom_call.1
= control target key start
LH: loop header
LB: loop body
LE: loop exit
PB: predicated region body
PF: predicated region fallthrough
CT: control target
= control target key end

     0   :  { %11 = vsyncpa [#allocation3], 0  ;;  %s1182_s0 = inlined_call_operand.hbm [shape: f32[8,16,16], index: 0, kind: input, shape index: {}]   ;;  %s1183_s1 = inlined_call_operand.vmem [shape: f32[16,16], index: 1, kind: input, shape index: {}]   ;;  %s1184_s2 = inlined_call_operand.vmem [shape: f32[16,8], index: 2, kind: input, shape index: {}]   ;;  %s1185_s3 = inlined_call_operand.vmem [shape: f32[16,4], index: 3, kind: input, shape index: {}]   ;;  %s1186_s4 = inlined_call_operand.hbm [shape: f32[8,8,8], index: 4, kind: output, shape index: {0}]   ;;  %s1187_s5 = inlined_call_operand.vmem [shape: f32[8,4,4], index: 5, kind: output, shape index: {1}]  }
   0x1   :  { %13 = vsyncpa [#allocation3 + $0x1], 0 }
   0x2   :  { %14 = vsyncpa [#allocation4], 0 }
   0x3   :  { %16 = vsyncpa [#allocation4 + $0x1], 0  ;;  %s991_s18 = smov 0   ;;  %s993_s19 = smov 0  }
   0x4   :  { %s995_s20 = smov 0   ;;  %s997_s21 = smov 0  }
   0x5 LB: > { %s1012_s22 = sadd.s32 4294967295, %s953_s21   ;;  %s717_s23 = sadd.s32 4294967294, %s953_s21   ;;  %s953_s21 = sphi %s997_s21, %s1199_s21   ;;  %s949_s20 = sphi %s995_s20, %s1198_s20   ;;  %s945_s19 = sphi %s993_s19, %s1197_s19   ;;  %s941_s18 = sphi %s991_s18, %s1196_s18  }
   0x6   : > { %s1016_s24 = sadd.s32 1, %s953_s21   ;;  %s29_s25 = sadd.s32 1, %s949_s20 }
   0x7   : > { %s26_s26 = ssub.s32 %s953_s21, %s1016_s24  ;;  %p36_p0 = scmp.ne.s32.totalorder %s949_s20, %s945_s19 }
   0x8   : > { %p27_p1 = scmp.eq.s32.totalorder %s26_s26, 0  ;;  %p37_p2 = scmp.eq.s32.totalorder %s953_s21, 0 }
   0x9   : > { %p42_p3 = scmp.ne.s32.totalorder %s945_s19, %s941_s18  ;;  %p43_p4 = scmp.eq.s32.totalorder %s1012_s22, 0 }
   0xa   : > { %s1028_s27 = scalar_select %p27_p1, %s949_s20, %s29_s25  }
   0xb   : > { %p1030_p5 = por %p37_p2, %p36_p0  ;;  %p1034_p6 = por %p43_p4, %p42_p3 }
   0xc   : > { %p129_p7 = scmp.eq.s32.totalorder %s1012_s22, 3  ;;  %p135_p8 = scmp.eq.s32.totalorder %s717_s23, 3 }
   0xd   : > { %p819_p9 = scmp.lt.s32.totalorder %s953_s21, 4  ;;  %s190_s7 = sand.u32 1, %s949_s20  }
   0xe   : > { %p1040_p10 = por %p129_p7, %p36_p0  ;;  %p1044_p11 = por %p135_p8, %p42_p3 }
   0xf   : > { %s745_s8 = sshll.u32 %s953_s21, 9  ;;  %s720_s9 = sshll.u32 %s190_s7, 5 }
  0x10   : > { %s1191_s30 = scalar_select %p1040_p10, 1, 0 }
  0x11   : > { %s1192_s6 = scalar_select %p1044_p11, 1, 0 }
  0x12   : > { %s1053_s12 = scalar_lea.hbm %s1182_s0, %s745_s8  ;;  %s194_s13 = scalar_lea.vmem [#allocation2], %s720_s9 }
  0x13   : > { %s202_s14 = sshll.u32 %s194_s13, 4  ;;  %p1057_p12 = pnand %p819_p9, %p1030_p5  ;;  %s1061_s14 = int_to_ptr.vmem [resolvable:$true] %s202_s14 }
  0x14   : > { %s1063_s16 = scalar_lea.sflag [#allocation3], %s190_s7  ;;  %s857_s17 = scalar_lea.hbm %s1053_s12, 512 }
  0x15   : > { %p858_p13 = scmp.ne.s32.totalorder %s1053_s12, %s857_s17  ;;  %p859_p0 = pneg %p1057_p12 }
  0x16   : > { %s862_s26 = scalar_lea.hbm %s1182_s0, 2048  ;;  %p863_p3 = scmp.lt.u32.totalorder %s1053_s12, %s1182_s0 }
  0x17   : > { %p860_p1 = pnand %p859_p0, %p858_p13  ;;  %p864_p4 = scmp.lt.u32.totalorder %s862_s26, %s857_s17 }
  0x18   : > { %p866_p7 = scmp.lt.u32.totalorder %s857_s17, %s1053_s12 }
  0x19   : > { %p861_p2 = pneg %p860_p1  ;;  %p865_p5 = por %p864_p4, %p863_p3 }
  0x1b   : > { %p867_p8 = por %p866_p7, %p865_p5 }
  0x1d   : > { %p868_p9 = pnand %p867_p8, %p861_p2 }
  0x1f   : > { %871 = shalt.err (!%p868_p9)
}
  0x20   : > { %s872_s7 = scalar_lea.vmem %s1061_s14, 512  ;;  %s955_s9 = smov [#allocation2]  }
  0x21   : > { %p873_p13 = scmp.ne.s32.totalorder %s1061_s14, %s872_s7  ;;  %s877_s10 = sshll.u32 %s955_s9, 4  ;;  %s878_s10 = int_to_ptr.vmem [resolvable:$false] %s877_s10 }
  0x22   : > { %s879_s11 = scalar_lea.vmem %s878_s10, 1024  ;;  %p880_p10 = scmp.lt.s32.totalorder %s1061_s14, %s878_s10 }
  0x23   : > { %p875_p1 = pnand %p873_p13, %p859_p0  ;;  %p881_p3 = scmp.lt.s32.totalorder %s879_s11, %s872_s7 }
  0x25   : > { %p876_p11 = pneg %p875_p1  ;;  %p882_p4 = por %p881_p3, %p880_p10 }
  0x27   : > { %p883_p5 = pnand %p882_p4, %p876_p11 }
  0x29   : > { %886 = shalt.err (!%p883_p5)
}
  0x2a   : > { %s956_s13 = smov 128   ;;  %s957_s17 = smov 8  }
  0x2b   : > { %814 = dma.hbm_to_vmem [thread:$0]  (!%p1057_p12), %s1053_s12, 512, %s1061_s14, %s1063_s16, %s956_s13, %s956_s13, %s957_s17  }
  0x2c   : > { %p724_p0 = scmp.ge.s32.totalorder %s953_s21, 1  ;;  %p210_p2 = scmp.lt.s32.totalorder %s953_s21, 5 }
  0x2e   : > { %p211_p7 = pnand %p724_p0, %p210_p2 }
  0x2f   : > { %s1094_s23 = sand.u32 (!%p211_p7), 1, %s945_s19  }
  0x30   : > { %214 = sbr.rel (%p211_p7) target bundleno = 506 (0x1fa), region = 36  ;;  %s725_s25 = sshll.u32 (!%p211_p7), %s1094_s23, 5 }
  0x31   : > { %s217_s26 = scalar_lea.sflag (!%p211_p7), [#allocation3], %s1094_s23  ;;  %s220_s28 = scalar_lea.vmem (!%p211_p7), [#allocation2], %s725_s25 }
  0x37   : > { %932 = dma.done.wait (%p1034_p6), %s217_s26, 512  }
  0x38   : > { %934 = vsyncadd (%p1034_p6), %s217_s26, 4294966784  ;;  %vm264_vm0 = vcmask 130048   ;;  %v262_v0 = vld [vmem:[%s220_s28] sm:$0xff]  ;;  %v263_v1 = vld [vmem:[%s220_s28 + $0x8] sm:$0xff]  ;;  %s727_s25 = sshll.u32 %s1012_s22, 1  ;;  %s726_s26 = sshll.u32 %s1094_s23, 4 }
  0x39   : > { %v731_v2 = vld [vmem:[%s220_s28 + $0x10] sm:$0xff]  ;;  %v791_v3 = vpack.c.bf16 %v263_v1, %v262_v0  ;;  %v732_v4 = vld [vmem:[%s220_s28 + $0x18] sm:$0xff]  ;;  %v260_v5 = vld [vmem:[%s1183_s1] sm:$0xff]  ;;  %p255_p6 = scmp.lt.s32.totalorder %s727_s25, 7  ;;  %s244_s28 = scalar_lea.vmem [#allocation5], %s726_s26  ;;  %vm507_vm1 = vcmask 64512  }
  0x3a   : > { %v795_v6 = vpack.c.bf16 %v732_v4, %v731_v2  ;;  %767 = vmatprep.mubr.msk.f32.mxu0 %vm264_vm0, %v260_v5  ;;  %774 = vmatprep.mubr.msk.f32.mxu1 %vm264_vm0, %v260_v5  ;;  %v424_v7 = vld [vmem:[%s1184_s2] sm:$0xff]  ;;  %v425_v8 = vld [vmem:[%s1184_s2 + $0x8] sm:$0xff]  ;;  %s615_s12 = sshll.u32 %s244_s28, 4  ;;  %s746_s15 = sshll.u32 %s1012_s22, 8  ;;  %vm593_vm2 = vcmask 27648   ;;  %s1131_s12 = int_to_ptr.vmem [resolvable:$true] %s615_s12 }
  0x3b   : > { %v510_v9 = vld [vmem:[%s1185_s3] sm:$0xff]  ;;  %792 = vmatprep.subr.bf16.mxu0 %v791_v3  ;;  %v799_v10 = vpack.c.bf16 %v425_v8, %v424_v7  ;;  %v511_v11 = vld [vmem:[%s1185_s3 + $0x8] sm:$0xff]  ;;  %s1201_s25 = smov (!%p255_p6, %s727_s25), 7  ;;  %s1139_s10 = scalar_lea.hbm %s1186_s4, %s746_s15 }
  0x3c   : > { %796 = vmatprep.subr.bf16.mxu1 %v795_v6  ;;  %794 = vmatpush3.bf16.msra.mxu0 %v791_v3  ;;  %v261_v12 = vld [vmem:[%s1183_s1 + $0x8] sm:$0xff]  ;;  %v803_v13 = vpack.c.bf16 %v511_v11, %v510_v9  ;;  %s728_s14 = sshll.u32 %s1201_s25, 2  ;;  %s597_s22 = scalar_lea.sflag [#allocation4], %s1094_s23 }
  0x3d   : > { %798 = vmatpush3.bf16.msra.mxu1 %v795_v6  ;;  %800 = vmatprep.subr.bf16.mxu0 %v799_v10  ;;  %s258_s8 = scalar_lea.vmem %s1187_s5, %s728_s14  ;;  %s887_s11 = scalar_lea.vmem %s1131_s12, 256 }
  0x3e   : > { %804 = vmatprep.subr.bf16.mxu1 %v803_v13  ;;  %p888_p10 = scmp.ne.s32.totalorder %s1131_s12, %s887_s11  ;;  %p1194_p11 = scmp.ne.s32.totalorder %s1191_s30, 0 }
  0x3f   : > { %768 = vmatmul.mubr.msk.f32.vlgmr.msra.gmra.mrb[0].mxu0 %vm264_vm0, %v261_v12  ;;  %s958_s13 = smov [#allocation5]  }
  0x40   : > { %775 = vmatmul.mubr.msk.f32.vlgmr.msra.gmra.mrb[0].mxu1 %vm264_vm0, %v261_v12  ;;  %802 = vmatpush3.bf16.msra.mxu0 %v799_v10  ;;  %p889_p12 = pnand %p888_p10, %p1194_p11  ;;  %s891_s17 = sshll.u32 %s958_s13, 4  ;;  %s892_s17 = int_to_ptr.vmem [resolvable:$false] %s891_s17 }
  0x41   : > { %806 = vmatpush3.bf16.msra.mxu1 %v803_v13  ;;  %s893_s25 = scalar_lea.vmem %s892_s17, 512  ;;  %p894_p9 = scmp.lt.s32.totalorder %s1131_s12, %s892_s17 }
  0x42   : > { %p890_p8 = pneg %p889_p12  ;;  %p895_p13 = scmp.lt.s32.totalorder %s893_s25, %s887_s11 }
  0x44   : > { %p896_p1 = por %p895_p13, %p894_p9 }
  0x46   : > { %p897_p3 = pnand %p896_p1, %p890_p8 }
 0x112   : > { %v769_v14 = vpop.f32.mrb[0].mxu0 }
 0x113   : > { %v776_v15 = vpop.f32.mrb[0].mxu1  ;;  %v337_v16 = vpop.f32.mrb[1].mxu0  ;;  %788 = vmatprep.mubr.msk.f32.mxu1 %vm264_vm0, %v769_v14 }
 0x114   : > { %v415_v17 = vpop.f32.mrb[1].mxu1  ;;  %781 = vmatprep.mubr.msk.f32.mxu0 %vm264_vm0, %v337_v16  ;;  %789 = vmatmul.mubr.msk.f32.vlgmr.msra.gmra.mrb[2].mxu1 %vm264_vm0, %v776_v15 }
 0x115   : > { %782 = vmatmul.mubr.msk.f32.vlgmr.msra.gmra.mrb[2].mxu0 %vm264_vm0, %v415_v17 }
 0x1e7   : > { %v790_v18 = vpop.f32.mrb[2].mxu1 }
 0x1e8   : > { %v783_v19 = vpop.f32.mrb[2].mxu0  ;;  %v584_v20 = vpop.f32.mrb[3].mxu1  ;;  %595 = vst.msk [vmem:[%s258_s8 + $0x4] sm:$0xf] %vm593_vm2, %v790_v18 }
 0x1e9   : > { %509 = vst.msk [vmem:[%s244_s28 + $0x8] sm:$0xff] %vm507_vm1, %v783_v19  ;;  %v498_v21 = vpop.f32.mrb[3].mxu0 }
 0x1ea   : > { %594 = vst.msk [vmem:[%s258_s8] sm:$0xf] %vm593_vm2, %v584_v20 }
 0x1eb   : > { %508 = vst.msk [vmem:[%s244_s28] sm:$0xff] %vm507_vm1, %v498_v21 }
 0x1ec   : > { %900 = shalt.err (!%p897_p3)
}
 0x1ed   : > { %s901_s26 = scalar_lea.hbm %s1139_s10, 256  ;;  %s905_s15 = scalar_lea.hbm %s1186_s4, 1024 }
 0x1ee   : > { %p902_p4 = scmp.ne.s32.totalorder %s1139_s10, %s901_s26  ;;  %p906_p2 = scmp.lt.u32.totalorder %s1139_s10, %s1186_s4 }
 0x1ef   : > { %p907_p7 = scmp.lt.u32.totalorder %s905_s15, %s901_s26  ;;  %p909_p10 = scmp.lt.u32.totalorder %s901_s26, %s1139_s10 }
 0x1f0   : > { %p903_p5 = pnand %p902_p4, %p1194_p11 }
 0x1f1   : > { %p908_p6 = por %p907_p7, %p906_p2 }
 0x1f2   : > { %p904_p0 = pneg %p903_p5 }
 0x1f3   : > { %p910_p12 = por %p909_p10, %p908_p6 }
 0x1f5   : > { %p911_p8 = pnand %p910_p12, %p904_p0 }
 0x1f7   : > { %914 = shalt.err (!%p911_p8)
}
 0x1f8   : > { %s959_s8 = smov 128   ;;  %s960_s7 = smov 8  }
 0x1f9   : > { %809 = dma.vmem_to_hbm [thread:$0]  (%p1194_p11), %s1131_s12, 256, %s1139_s10, %s597_s22, %s959_s8, %s959_s8, %s960_s7  }
 0x1fa PF: > { %p820_p9 = scmp.ge.s32.totalorder %s953_s21, 2  ;;  %s634_s9 = sand.u32 1, %s941_s18  }
 0x1fb   : > { %p1195_p13 = scmp.ne.s32.totalorder %s1192_s6, 0  ;;  %s635_s11 = scalar_lea.sflag [#allocation4], %s634_s9 }
 0x1fd   : > { %p816_p1 = pnand %p820_p9, %p1195_p13 }
 0x1ff   : > { %936 = dma.done.wait (!%p816_p1), %s635_s11, 256  }
 0x200   : > { %938 = vsyncadd (!%p816_p1), %s635_s11, 4294967040  ;;  %p19_p3 = scmp.ge.s32.totalorder %s1016_s24, 6   ;;  %s1196_s18 = smov %s945_s19 }
 0x201   : > { %s1197_s19 = smov %s949_s20  ;;  %s1198_s20 = smov %s1028_s27 }
 0x202   : > { %s1199_s21 = smov %s1016_s24  ;;  %21 = sbr.rel (!%p19_p3) target bundleno = 5 (0x5), region = 94 }
 0x209   :  { %648 = vsyncpa [#allocation3], 1 }
 0x20a   :  { %650 = vsyncpa [#allocation3 + $0x1], 1 }
 0x20b   :  { %651 = vsyncpa [#allocation4], 1 }
 0x20c   :  { %653 = vsyncpa [#allocation4 + $0x1], 1 }

</bundles_post_ra>
